<compile_context>
chip_gen: v6e
topology: v6e:2x2x1
jax: 0.10.0
libtpu: 0.0.40
codegen_flags: <defaults>
</compile_context>

<pallas_src>
import jax
import jax.numpy as jnp
from jax.experimental import pallas as pl
from jax.experimental.pallas import tpu as pltpu

_LANE = 128


# ---------------------------------------------------------------------------
# Capability probe (compile-only, cached): can Mosaic lower the
# (rows, 1) -> (1, rows) f32 transpose used for the lane-dense output?
# ---------------------------------------------------------------------------
_LANE_DENSE_OK = {}


def _lane_dense_supported(rows):
    ok = _LANE_DENSE_OK.get(rows)
    if ok is None:
        def _probe_kernel(x_ref, o_ref):
            o_ref[...] = jnp.transpose(x_ref[...])
        try:
            probe = pl.pallas_call(
                _probe_kernel,
                out_shape=jax.ShapeDtypeStruct((1, rows), jnp.float32))
            # Lower + compile only; no device execution, no blocking transfer.
            jax.jit(probe).lower(
                jax.ShapeDtypeStruct((rows, 1), jnp.float32)).compile()
            ok = True
        except Exception:
            ok = False
        _LANE_DENSE_OK[rows] = ok
    return ok


# ---------------------------------------------------------------------------
# Kernel
# ---------------------------------------------------------------------------
def _make_multi_pos_ce_kernel(n_rows, block_rows, ragged, lane_dense):
    """Per-row multi-positive cross-entropy over a (block_rows, C) tile."""

    def kernel(pred_ref, label_ref, loss_ref):
        pred = pred_ref[...].astype(jnp.float32)      # (TN, C) f32 math
        lab = label_ref[...]                          # native dtype, no cast
        pos = lab == 1
        neg = lab == 0

        neg_inf = jnp.float32(-jnp.inf)
        npred = -pred

        # Row maxes of the two factors (for numerical stability).
        m_neg = jnp.max(jnp.where(neg, pred, neg_inf), axis=1, keepdims=True)
        m_pos = jnp.max(jnp.where(pos, npred, neg_inf), axis=1, keepdims=True)

        # Labels that are neither 0 nor 1 contribute exp(0) to both factors
        # (exact reference semantics).  Per-row count only.
        n_other = jnp.sum(jnp.where(jnp.logical_or(pos, neg), 0.0, 1.0),
                          axis=1, keepdims=True)
        has_other = n_other > 0.0
        m_neg = jnp.where(has_other, jnp.maximum(m_neg, 0.0), m_neg)
        m_pos = jnp.where(has_other, jnp.maximum(m_pos, 0.0), m_pos)

        # Safe shifts (avoid -inf - -inf); degenerate rows gated out below.
        m_neg_s = jnp.where(m_neg == neg_inf, 0.0, m_neg)
        m_pos_s = jnp.where(m_pos == neg_inf, 0.0, m_pos)

        # Single full-tile exp (EUP): each element belongs to at most one of
        # the two sums, so one exp per element suffices.
        u = jnp.where(pos, npred - m_pos_s, pred - m_neg_s)
        e = jnp.exp(u)
        t_pos = (jnp.sum(jnp.where(pos, e, 0.0), axis=1, keepdims=True)
                 + n_other * jnp.exp(-m_pos_s))
        t_neg = (jnp.sum(jnp.where(neg, e, 0.0), axis=1, keepdims=True)
                 + n_other * jnp.exp(-m_neg_s))

        # logsumexp over {0} U {all (pos, neg) pairs}.
        m_pair = m_neg + m_pos                               # (TN, 1)
        valid = m_pair > neg_inf                             # False for -inf/NaN
        big_m = jnp.where(valid, jnp.maximum(m_pair, 0.0), 0.0)
        pair = jnp.where(valid, jnp.exp(m_pair - big_m) * t_neg * t_pos, 0.0)
        loss_col = jnp.where(big_m == 0.0,
                             jnp.log1p(pair),
                             big_m + jnp.log(jnp.exp(-big_m) + pair))

        if ragged:
            # Only gate the final (TN, 1) column; OOB rows may have computed
            # garbage but rows are independent and the select drops it.
            row = (pl.program_id(0) * block_rows
                   + jax.lax.broadcasted_iota(jnp.int32, (block_rows, 1), 0))
            loss_col = jnp.where(row < n_rows, loss_col, 0.0)

        if lane_dense:
            # (TN, 1) column -> (1, 1, TN) lane-dense row (unmasked stores).
            loss_ref[...] = jnp.transpose(loss_col).reshape(1, 1, block_rows)
        else:
            loss_ref[...] = loss_col

    return kernel


# ---------------------------------------------------------------------------
# Block sizing: native bytes incl. lane padding, VMEM budget, >=2 blocks.
# ---------------------------------------------------------------------------
def _sublane_multiple(dtype):
    # 8 sublanes for 32-bit, 16 for 16-bit, 32 for 8-bit dtypes.
    return max(8, 32 // jnp.dtype(dtype).itemsize)


def _compute_block_rows(N, C, pred_dtype, label_dtype, *,
                        target_input_bytes=2 << 20,      # ~2 MiB / input / step
                        vmem_budget_bytes=28 << 20,      # est. footprint cap
                        max_block_rows=8192):
    sub = max(_sublane_multiple(pred_dtype), _sublane_multiple(label_dtype))
    c_pad = pl.cdiv(C, _LANE) * _LANE                    # real lane footprint
    p_isz = jnp.dtype(pred_dtype).itemsize
    l_isz = jnp.dtype(label_dtype).itemsize

    # HBM-transfer target: ~target_input_bytes of NATIVE bytes per input block.
    br_target = max(1, target_input_bytes // max(1, c_pad * max(p_isz, l_isz)))
    # VMEM budget: 2x double-buffered native inputs + ~4 live f32 temporaries.
    per_row_vmem = 2 * c_pad * (p_isz + l_isz) + 4 * c_pad * 4
    br_vmem = max(1, vmem_budget_bytes // per_row_vmem)

    br = min(br_target, br_vmem, max_block_rows)
    if N <= sub:
        return N                                         # single full block
    br = max(sub, (br // sub) * sub)
    br = min(br, pl.cdiv(N, sub) * sub)                  # don't exceed N (padded)
    # Ensure >=2 grid blocks when N allows so the "parallel" row axis can
    # shard across both TensorCores on v7x.
    if br >= N and N >= 2 * sub:
        half = (N + 1) // 2
        br = max(sub, pl.cdiv(half, sub) * sub)
    return br


# ---------------------------------------------------------------------------
# Wrapper
# ---------------------------------------------------------------------------
def multi_pos_cross_entropy_rows(pred, label, *,
                                 max_block_rows=8192,
                                 target_input_bytes=2 << 20):
    """Per-row loss (shape (N,)) computed by the Pallas kernel."""
    assert pred.ndim == 2 and pred.shape == label.shape
    N, C = pred.shape
    if N == 0:
        return jnp.zeros((0,), jnp.float32)

    br = _compute_block_rows(N, C, pred.dtype, label.dtype,
                             target_input_bytes=target_input_bytes,
                             max_block_rows=max_block_rows)
    num_blocks = pl.cdiv(N, br)
    ragged = (N % br) != 0
    lane_dense = (br % 8 == 0) and _lane_dense_supported(br)

    kernel = _make_multi_pos_ce_kernel(N, br, ragged, lane_dense)

    in_specs = [pl.BlockSpec((br, C), lambda i: (i, 0)),
                pl.BlockSpec((br, C), lambda i: (i, 0))]
    if lane_dense:
        out_shape = jax.ShapeDtypeStruct((num_blocks, 1, br), jnp.float32)
        out_specs = pl.BlockSpec((1, 1, br), lambda i: (i, 0, 0))
    else:
        out_shape = jax.ShapeDtypeStruct((N, 1), jnp.float32)
        out_specs = pl.BlockSpec((br, 1), lambda i: (i, 0))

    bytes_accessed = int(N * C * (jnp.dtype(pred.dtype).itemsize
                                  + jnp.dtype(label.dtype).itemsize) + 4 * N)
    cost = pl.CostEstimate(flops=int(14 * N * C),
                           transcendentals=int(N * C),
                           bytes_accessed=bytes_accessed)

    out = pl.pallas_call(
        kernel,
        out_shape=out_shape,
        grid=(num_blocks,),
        in_specs=in_specs,
        out_specs=out_specs,
        compiler_params=pltpu.CompilerParams(
            dimension_semantics=("parallel",),
            vmem_limit_bytes=48 * 1024 * 1024),
        cost_estimate=cost,
    )(pred, label)

    if lane_dense:
        return out.reshape(-1)[:N]
    return out[:, 0]


# ---------------------------------------------------------------------------
# Glue: weight / reduction handling (mirrors torch weight_reduce_loss)
# ---------------------------------------------------------------------------
def weight_reduce_loss(loss, weight=None, reduction='mean', avg_factor=None):
    if weight is not None:
        loss = loss * weight.astype(jnp.float32)
    if avg_factor is None:
        if reduction == 'mean':
            return jnp.mean(loss)
        elif reduction == 'sum':
            return jnp.sum(loss)
        return loss
    elif reduction == 'mean':
        eps = jnp.finfo(jnp.float32).eps
        return jnp.sum(loss) / (avg_factor + eps)
    elif reduction != 'none':
        raise ValueError('avg_factor can not be used with reduction="sum"')
    return loss


def multi_pos_cross_entropy(pred, label, weight=None, reduction='mean',
                            avg_factor=None):
    loss = multi_pos_cross_entropy_rows(pred, label)
    return weight_reduce_loss(loss, weight=weight, reduction=reduction,
                              avg_factor=avg_factor)


class MultiPosCrossEntropyLoss:
    """JAX/Pallas equivalent of the PyTorch module (no learnable params)."""

    def __init__(self, reduction='mean', loss_weight=1.0):
        self.reduction = reduction
        self.loss_weight = loss_weight

    def __call__(self, cls_score, label, weight=None, avg_factor=None,
                 reduction_override=None):
        assert cls_score.shape == label.shape
        assert reduction_override in (None, 'none', 'mean', 'sum')
        reduction = reduction_override if reduction_override else self.reduction
        return self.loss_weight * multi_pos_cross_entropy(
            cls_score, label, weight, reduction=reduction,
            avg_factor=avg_factor)


# ---------------------------------------------------------------------------
# Pure-JAX reference (literal transcription of the torch code) for checking.
# ---------------------------------------------------------------------------
def _reference_multi_pos_ce_rows(pred, label):
    pos = label == 1.0
    neg = label == 0.0
    pred_pos = jnp.where(neg, jnp.inf, jnp.where(pos, pred, 0.0))
    pred_neg = jnp.where(pos, -jnp.inf, jnp.where(neg, pred, 0.0))
    C = pred.shape[1]
    pos_expand = jnp.repeat(pred_pos, C, axis=1)        # repeat_interleave
    neg_expand = jnp.tile(pred_neg, (1, C))             # .repeat(1, C)
    x = jnp.pad(neg_expand - pos_expand, ((0, 0), (0, 1)))
    return jax.scipy.special.logsumexp(x, axis=1)


if __name__ == "__main__":
    key = jax.random.PRNGKey(0)
    k1, k2, k3 = jax.random.split(key, 3)

    # N deliberately not a multiple of the row tile -> exercises the in-kernel
    # ragged-tail gating (no wrapper-side padding copy).
    N, C = 22, 32
    cls_score = jax.random.normal(k1, (N, C), dtype=jnp.float32)
    label = jax.random.bernoulli(k2, p=0.3, shape=(N, C)).astype(jnp.float32)
    label = label.at[:, 0].set(1.0)    # at least one positive per row
    weight = jax.random.uniform(k3, (N,), dtype=jnp.float32)

    loss_mod = MultiPosCrossEntropyLoss(reduction='mean', loss_weight=1.0)
    out = jax.block_until_ready(loss_mod(cls_score, label, weight=weight))

    ref_rows = _reference_multi_pos_ce_rows(cls_score, label)
    ref = jnp.mean(ref_rows * weight)
    assert jnp.allclose(out, ref, rtol=1e-5, atol=1e-5), (out, ref)

    # 'none' and 'sum' reductions
    out_none = jax.block_until_ready(
        loss_mod(cls_score, label, reduction_override='none'))
    assert jnp.allclose(out_none, ref_rows, rtol=1e-5, atol=1e-5)
    out_sum = jax.block_until_ready(
        loss_mod(cls_score, label, reduction_override='sum'))
    assert jnp.allclose(out_sum, jnp.sum(ref_rows), rtol=1e-5, atol=1e-5)

    # Labels with values that are neither 0 nor 1 ("other") — exercises the
    # per-row n_other correction path.
    label_other = label.at[:, 5].set(2.0).at[:, 11].set(-1.0)
    out_other = jax.block_until_ready(
        loss_mod(cls_score, label_other, reduction_override='none'))
    ref_other = _reference_multi_pos_ce_rows(cls_score, label_other)
    assert jnp.allclose(out_other, ref_other, rtol=1e-5, atol=1e-5)

    # Mixed-dtype path: bf16 scores fed straight to the kernel (no wrapper
    # cast); the kernel does its math in f32 after the in-register cast.
    cls_bf16 = cls_score.astype(jnp.bfloat16)
    out_bf16 = jax.block_until_ready(
        loss_mod(cls_bf16, label, reduction_override='none'))
    ref_bf16 = _reference_multi_pos_ce_rows(cls_bf16.astype(jnp.float32), label)
    assert jnp.allclose(out_bf16, ref_bf16, rtol=1e-4, atol=1e-4)

    print("KERNEL_OK")
</pallas_src>

<mosaic_0001>
module attributes {stable_mosaic.version = 11 : i64} {
  func.func @kernel(%arg0: i32, %arg1: memref<16x32xf32, #tpu.memory_space<vmem>>, %arg2: memref<16x32xf32, #tpu.memory_space<vmem>>, %arg3: memref<16x1xf32, #tpu.memory_space<vmem>>) attributes {dimension_semantics = [#tpu.dimension_semantics<parallel>], iteration_bounds = array<i64: 2>, scalar_prefetch = 0 : i64, scratch_operands = 0 : i64, tpu.core_type = #tpu.core_type<tc>, window_params = [{transform_indices = @transform_0, window_bounds = array<i64: 16, 32>}, {transform_indices = @transform_1, window_bounds = array<i64: 16, 32>}, {transform_indices = @transform_2, window_bounds = array<i64: 16, 1>}]} {
    %c0 = arith.constant 0 : index
    %c0_0 = arith.constant 0 : index
    %0 = vector.load %arg1[%c0, %c0_0] : memref<16x32xf32, #tpu.memory_space<vmem>>, vector<16x32xf32>
    %c0_1 = arith.constant 0 : index
    %c0_2 = arith.constant 0 : index
    %1 = vector.load %arg2[%c0_1, %c0_2] : memref<16x32xf32, #tpu.memory_space<vmem>>, vector<16x32xf32>
    %cst = arith.constant 1.000000e+00 : f32
    %2 = vector.broadcast %cst : f32 to vector<16x32xf32>
    %3 = arith.cmpf oeq, %1, %2 : vector<16x32xf32>
    %cst_3 = arith.constant 0.000000e+00 : f32
    %4 = vector.broadcast %cst_3 : f32 to vector<16x32xf32>
    %5 = arith.cmpf oeq, %1, %4 : vector<16x32xf32>
    %cst_4 = arith.constant 0.000000e+00 : f32
    %6 = vector.broadcast %cst_4 : f32 to vector<16x32xf32>
    %7 = arith.subf %6, %0 : vector<16x32xf32>
    %cst_5 = arith.constant 0xFF800000 : f32
    %8 = vector.broadcast %cst_5 : f32 to vector<16x32xf32>
    %9 = arith.select %5, %0, %8 : vector<16x32xi1>, vector<16x32xf32>
    %cst_6 = arith.constant dense<0xFF800000> : vector<16xf32>
    %10 = vector.multi_reduction <maximumf>, %9, %cst_6 [1] : vector<16x32xf32> to vector<16xf32>
    %11 = vector.shape_cast %10 : vector<16xf32> to vector<16x1xf32>
    %cst_7 = arith.constant 0xFF800000 : f32
    %12 = vector.broadcast %cst_7 : f32 to vector<16x32xf32>
    %13 = arith.select %3, %7, %12 : vector<16x32xi1>, vector<16x32xf32>
    %cst_8 = arith.constant dense<0xFF800000> : vector<16xf32>
    %14 = vector.multi_reduction <maximumf>, %13, %cst_8 [1] : vector<16x32xf32> to vector<16xf32>
    %15 = vector.shape_cast %14 : vector<16xf32> to vector<16x1xf32>
    %16 = arith.ori %3, %5 : vector<16x32xi1>
    %cst_9 = arith.constant 0.000000e+00 : f32
    %cst_10 = arith.constant 1.000000e+00 : f32
    %17 = vector.broadcast %cst_9 : f32 to vector<16x32xf32>
    %18 = vector.broadcast %cst_10 : f32 to vector<16x32xf32>
    %19 = arith.select %16, %17, %18 : vector<16x32xi1>, vector<16x32xf32>
    %cst_11 = arith.constant dense<0.000000e+00> : vector<16xf32>
    %20 = vector.multi_reduction <add>, %19, %cst_11 [1] : vector<16x32xf32> to vector<16xf32>
    %21 = vector.shape_cast %20 : vector<16xf32> to vector<16x1xf32>
    %cst_12 = arith.constant 0.000000e+00 : f32
    %22 = vector.broadcast %cst_12 : f32 to vector<16x1xf32>
    %23 = arith.cmpf ogt, %21, %22 : vector<16x1xf32>
    %cst_13 = arith.constant 0.000000e+00 : f32
    %24 = vector.broadcast %cst_13 : f32 to vector<16x1xf32>
    %25 = arith.maximumf %11, %24 : vector<16x1xf32>
    %26 = arith.select %23, %25, %11 : vector<16x1xi1>, vector<16x1xf32>
    %cst_14 = arith.constant 0.000000e+00 : f32
    %27 = vector.broadcast %cst_14 : f32 to vector<16x1xf32>
    %28 = arith.maximumf %15, %27 : vector<16x1xf32>
    %29 = arith.select %23, %28, %15 : vector<16x1xi1>, vector<16x1xf32>
    %cst_15 = arith.constant 0xFF800000 : f32
    %30 = vector.broadcast %cst_15 : f32 to vector<16x1xf32>
    %31 = arith.cmpf oeq, %26, %30 : vector<16x1xf32>
    %cst_16 = arith.constant 0.000000e+00 : f32
    %32 = vector.broadcast %cst_16 : f32 to vector<16x1xf32>
    %33 = arith.select %31, %32, %26 : vector<16x1xi1>, vector<16x1xf32>
    %cst_17 = arith.constant 0xFF800000 : f32
    %34 = vector.broadcast %cst_17 : f32 to vector<16x1xf32>
    %35 = arith.cmpf oeq, %29, %34 : vector<16x1xf32>
    %cst_18 = arith.constant 0.000000e+00 : f32
    %36 = vector.broadcast %cst_18 : f32 to vector<16x1xf32>
    %37 = arith.select %35, %36, %29 : vector<16x1xi1>, vector<16x1xf32>
    %38 = vector.broadcast %37 : vector<16x1xf32> to vector<16x32xf32>
    %39 = arith.subf %7, %38 : vector<16x32xf32>
    %40 = vector.broadcast %33 : vector<16x1xf32> to vector<16x32xf32>
    %41 = arith.subf %0, %40 : vector<16x32xf32>
    %42 = arith.select %3, %39, %41 : vector<16x32xi1>, vector<16x32xf32>
    %43 = math.exp %42 : vector<16x32xf32>
    %cst_19 = arith.constant 0.000000e+00 : f32
    %44 = vector.broadcast %cst_19 : f32 to vector<16x32xf32>
    %45 = arith.select %3, %43, %44 : vector<16x32xi1>, vector<16x32xf32>
    %cst_20 = arith.constant dense<0.000000e+00> : vector<16xf32>
    %46 = vector.multi_reduction <add>, %45, %cst_20 [1] : vector<16x32xf32> to vector<16xf32>
    %47 = vector.shape_cast %46 : vector<16xf32> to vector<16x1xf32>
    %cst_21 = arith.constant 0.000000e+00 : f32
    %48 = vector.broadcast %cst_21 : f32 to vector<16x1xf32>
    %49 = arith.subf %48, %37 : vector<16x1xf32>
    %50 = math.exp %49 : vector<16x1xf32>
    %51 = arith.mulf %21, %50 : vector<16x1xf32>
    %52 = arith.addf %47, %51 : vector<16x1xf32>
    %cst_22 = arith.constant 0.000000e+00 : f32
    %53 = vector.broadcast %cst_22 : f32 to vector<16x32xf32>
    %54 = arith.select %5, %43, %53 : vector<16x32xi1>, vector<16x32xf32>
    %cst_23 = arith.constant dense<0.000000e+00> : vector<16xf32>
    %55 = vector.multi_reduction <add>, %54, %cst_23 [1] : vector<16x32xf32> to vector<16xf32>
    %56 = vector.shape_cast %55 : vector<16xf32> to vector<16x1xf32>
    %cst_24 = arith.constant 0.000000e+00 : f32
    %57 = vector.broadcast %cst_24 : f32 to vector<16x1xf32>
    %58 = arith.subf %57, %33 : vector<16x1xf32>
    %59 = math.exp %58 : vector<16x1xf32>
    %60 = arith.mulf %21, %59 : vector<16x1xf32>
    %61 = arith.addf %56, %60 : vector<16x1xf32>
    %62 = arith.addf %26, %29 : vector<16x1xf32>
    %cst_25 = arith.constant 0xFF800000 : f32
    %63 = vector.broadcast %cst_25 : f32 to vector<16x1xf32>
    %64 = arith.cmpf ogt, %62, %63 : vector<16x1xf32>
    %cst_26 = arith.constant 0.000000e+00 : f32
    %65 = vector.broadcast %cst_26 : f32 to vector<16x1xf32>
    %66 = arith.maximumf %62, %65 : vector<16x1xf32>
    %cst_27 = arith.constant 0.000000e+00 : f32
    %67 = vector.broadcast %cst_27 : f32 to vector<16x1xf32>
    %68 = arith.select %64, %66, %67 : vector<16x1xi1>, vector<16x1xf32>
    %69 = arith.subf %62, %68 : vector<16x1xf32>
    %70 = math.exp %69 : vector<16x1xf32>
    %71 = arith.mulf %70, %61 : vector<16x1xf32>
    %72 = arith.mulf %71, %52 : vector<16x1xf32>
    %cst_28 = arith.constant 0.000000e+00 : f32
    %73 = vector.broadcast %cst_28 : f32 to vector<16x1xf32>
    %74 = arith.select %64, %72, %73 : vector<16x1xi1>, vector<16x1xf32>
    %cst_29 = arith.constant 0.000000e+00 : f32
    %75 = vector.broadcast %cst_29 : f32 to vector<16x1xf32>
    %76 = arith.cmpf oeq, %68, %75 : vector<16x1xf32>
    %77 = math.log1p %74 : vector<16x1xf32>
    %cst_30 = arith.constant 0.000000e+00 : f32
    %78 = vector.broadcast %cst_30 : f32 to vector<16x1xf32>
    %79 = arith.subf %78, %68 : vector<16x1xf32>
    %80 = math.exp %79 : vector<16x1xf32>
    %81 = arith.addf %80, %74 : vector<16x1xf32>
    %82 = math.log %81 : vector<16x1xf32>
    %83 = arith.addf %68, %82 : vector<16x1xf32>
    %84 = arith.select %76, %77, %83 : vector<16x1xi1>, vector<16x1xf32>
    %c16_i32 = arith.constant 16 : i32
    %85 = arith.muli %arg0, %c16_i32 : i32
    %86 = tpu.iota {dimensions = array<i32: 0>} : vector<16x1xi32>
    %87 = vector.broadcast %85 : i32 to vector<16x1xi32>
    %88 = arith.addi %87, %86 : vector<16x1xi32>
    %c22_i32 = arith.constant 22 : i32
    %89 = vector.broadcast %c22_i32 : i32 to vector<16x1xi32>
    %90 = arith.cmpi slt, %88, %89 : vector<16x1xi32>
    %cst_31 = arith.constant 0.000000e+00 : f32
    %91 = vector.broadcast %cst_31 : f32 to vector<16x1xf32>
    %92 = arith.select %90, %84, %91 : vector<16x1xi1>, vector<16x1xf32>
    %c0_32 = arith.constant 0 : index
    %c0_33 = arith.constant 0 : index
    %93 = vector.load %arg3[%c0_32, %c0_33] : memref<16x1xf32, #tpu.memory_space<vmem>>, vector<16x1xf32>
    tpu.vector_store %arg3[%c0_32, %c0_33], %92 {strides = array<i32>} : memref<16x1xf32, #tpu.memory_space<vmem>>, vector<16x1xf32>,
    return
  }
  func.func @transform_0(%arg0: i32) -> (i32, i32) {
    %c0_i32 = arith.constant 0 : i32
    %c0_i32_0 = arith.constant 0 : i32
    return %arg0, %c0_i32 : i32, i32
  }
  func.func @transform_1(%arg0: i32) -> (i32, i32) {
    %c0_i32 = arith.constant 0 : i32
    %c0_i32_0 = arith.constant 0 : i32
    return %arg0, %c0_i32 : i32, i32
  }
  func.func @transform_2(%arg0: i32) -> (i32, i32) {
    %c0_i32 = arith.constant 0 : i32
    %c0_i32_0 = arith.constant 0 : i32
    return %arg0, %c0_i32 : i32, i32
  }
}

</mosaic_0001>

<bundles_post_ra>
// kernel: tpu_custom_call.1
= control target key start
LH: loop header
LB: loop body
LE: loop exit
PB: predicated region body
PF: predicated region fallthrough
CT: control target
= control target key end

     0   :  { %7 = vsyncpa [#allocation3], 0  ;;  %s1299_s0 = inlined_call_operand.hbm [shape: f32[22,32], index: 0, kind: input, shape index: {}]   ;;  %s1300_s1 = inlined_call_operand.hbm [shape: f32[22,32], index: 1, kind: input, shape index: {}]   ;;  %s1301_s2 = inlined_call_operand.vmem [shape: f32[22,1], index: 2, kind: output, shape index: {}]  }
   0x1   :  { %9 = vsyncpa [#allocation3 + $0x1], 0 }
   0x2   :  { %10 = vsyncpa [#allocation5], 0 }
   0x3   :  { %12 = vsyncpa [#allocation5 + $0x1], 0  ;;  %s1003_s9 = smov 0   ;;  %s1005_s10 = smov 0  }
   0x4   :  { %s1007_s11 = smov 0   ;;  %s1009_s12 = smov 0  }
   0x5 LB: > { %s1022_s13 = sadd.s32 4294967295, %s947_s12   ;;  %s1025_s14 = sadd.s32 1, %s947_s12   ;;  %s947_s12 = sphi %s1009_s12, %s1309_s12   ;;  %s943_s11 = sphi %s1007_s11, %s1308_s11   ;;  %s939_s10 = sphi %s1005_s10, %s1307_s10   ;;  %s935_s9 = sphi %s1003_s9, %s1306_s9  }
   0x6   : > { %s22_s15 = ssub.s32 %s947_s12, %s1025_s14  ;;  %s25_s16 = sadd.s32 1, %s943_s11 }
   0x7   : > { %p23_p0 = scmp.eq.s32.totalorder %s22_s15, 0  ;;  %p32_p1 = scmp.ne.s32.totalorder %s943_s11, %s939_s10 }
   0x8   : > { %p33_p2 = scmp.eq.s32.totalorder %s947_s12, 0  ;;  %p38_p3 = scmp.ne.s32.totalorder %s939_s10, %s935_s9 }
   0x9   : > { %s1035_s17 = scalar_select %p23_p0, %s943_s11, %s25_s16  }
   0xa   : > { %p1037_p4 = por %p33_p2, %p32_p1  ;;  %p39_p5 = scmp.eq.s32.totalorder %s1022_s13, 0 }
   0xb   : > { %p88_p6 = scmp.eq.s32.totalorder %s1022_s13, 1  ;;  %p652_p9 = scmp.ge.s32.totalorder %s947_s12, 2 }
   0xc   : > { %p1043_p7 = por %p39_p5, %p38_p3 }
   0xd   : > { %p1047_p8 = por %p88_p6, %p32_p1  ;;  %110 = sbr.rel (%p652_p9) target bundleno = 82 (0x52), region = 16 }
   0xf   : > { %s1304_s20 = scalar_select %p1047_p8, 1, 0 }
  0x12   : > { %113 = sbr.rel (!%p1037_p4) target bundleno = 50 (0x32), region = 20  ;;  %s114_s21 = sand.u32 (%p1037_p4), 1, %s943_s11  }
  0x13   : > { %s654_s22 = sshll.u32 (%p1037_p4), %s947_s12, 1  ;;  %s653_s23 = sshll.u32 (%p1037_p4), %s114_s21, 4 }
  0x14   : > { %s120_s24 = ssub.s32 (%p1037_p4), 3, %s654_s22  ;;  %s1059_s27 = scalar_lea.sflag (%p1037_p4), [#allocation3], %s114_s21 }
  0x15   : > { %p121_p10 = scmp.lt.s32.totalorder (%p1037_p4), %s120_s24, 2  ;;  %s118_s28 = scalar_lea.vmem (%p1037_p4), [#allocation2], %s653_s23 }
  0x17   : > { %s1311_s24 = smov (!%p121_p10, %s120_s24), 2 }
  0x18   : > { %s1056_s25 = sshll.u32 %s1311_s24, 7 }
  0x19   : > { %s125_s26 = ssub.s32 256, %s1056_s25 }
  0x1a   : > { %126 = vsyncadd %s1059_s27, %s125_s26  ;;  %p656_p11 = scmp.ne.s32.totalorder %s1056_s25, 0  ;;  %s689_s29 = sshll.u32 %s947_s12, 8 }
  0x1b   : > { %s1067_s4 = scalar_lea.hbm %s1299_s0, %s689_s29  ;;  %s131_s5 = sshll.u32 %s118_s28, 4  ;;  %s1069_s5 = int_to_ptr.vmem [resolvable:$true] %s131_s5 }
  0x1c   : > { %s825_s6 = scalar_lea.hbm %s1067_s4, %s1056_s25  ;;  %s829_s9 = scalar_lea.hbm %s1299_s0, 384 }
  0x1d   : > { %p826_p12 = scmp.ne.s32.totalorder %s1067_s4, %s825_s6  ;;  %p830_p1 = scmp.lt.s32.totalorder %s1067_s4, %s1299_s0 }
  0x1e   : > { %p831_p2 = scmp.lt.s32.totalorder %s829_s9, %s825_s6 }
  0x1f   : > { %p827_p13 = pnand %p826_p12, %p656_p11 }
  0x20   : > { %p832_p3 = por %p831_p2, %p830_p1 }
  0x21   : > { %p828_p0 = pneg %p827_p13 }
  0x23   : > { %p833_p5 = pnand %p832_p3, %p828_p0 }
  0x25   : > { %836 = shalt.err (!%p833_p5)
}
  0x26   : > { %s837_s21 = scalar_lea.vmem %s1069_s5, %s1056_s25  ;;  %s981_s22 = smov [#allocation2]  }
  0x27   : > { %p838_p6 = scmp.ne.s32.totalorder %s1069_s5, %s837_s21  ;;  %s841_s23 = sshll.u32 %s981_s22, 4  ;;  %s842_s23 = int_to_ptr.vmem [resolvable:$false] %s841_s23 }
  0x28   : > { %s843_s24 = scalar_lea.vmem %s842_s23, 512  ;;  %p844_p12 = scmp.lt.s32.totalorder %s1069_s5, %s842_s23 }
  0x29   : > { %p839_p9 = pnand %p838_p6, %p656_p11  ;;  %p845_p13 = scmp.lt.s32.totalorder %s843_s24, %s837_s21 }
  0x2b   : > { %p840_p10 = pneg %p839_p9  ;;  %p846_p8 = por %p845_p13, %p844_p12 }
  0x2d   : > { %p847_p1 = pnand %p846_p8, %p840_p10 }
  0x2f   : > { %850 = shalt.err (!%p847_p1)
}
  0x30   : > { %s982_s26 = smov 128   ;;  %s983_s28 = smov 8  }
  0x31   : > { %137 = dma.hbm_to_vmem [thread:$0]  (%p656_p11), %s1067_s4, %s1056_s25, %s1069_s5, %s1059_s27, %s982_s26, %s982_s26, %s983_s28  }
  0x32 PF: > { %140 = sbr.rel (!%p1037_p4) target bundleno = 82 (0x52), region = 24  ;;  %s141_s29 = sand.u32 (%p1037_p4), 1, %s943_s11  }
  0x33   : > { %s661_s30 = sshll.u32 (%p1037_p4), %s947_s12, 1  ;;  %s660_s3 = sshll.u32 (%p1037_p4), %s141_s29, 4 }
  0x34   : > { %s147_s6 = ssub.s32 (%p1037_p4), 3, %s661_s30  ;;  %s1102_s9 = scalar_lea.sflag (%p1037_p4), [#allocation5], %s141_s29 }
  0x35   : > { %p148_p8 = scmp.lt.s32.totalorder (%p1037_p4), %s147_s6, 2  ;;  %s145_s25 = scalar_lea.vmem (%p1037_p4), [#allocation4], %s660_s3 }
  0x37   : > { %s1313_s6 = smov (!%p148_p8, %s147_s6), 2 }
  0x38   : > { %s1099_s7 = sshll.u32 %s1313_s6, 7 }
  0x39   : > { %s152_s8 = ssub.s32 256, %s1099_s7 }
  0x3a   : > { %153 = vsyncadd %s1102_s9, %s152_s8  ;;  %p663_p4 = scmp.ne.s32.totalorder %s1099_s7, 0  ;;  %s690_s18 = sshll.u32 %s947_s12, 8 }
  0x3b   : > { %s1110_s5 = scalar_lea.hbm %s1300_s1, %s690_s18  ;;  %s158_s15 = sshll.u32 %s145_s25, 4  ;;  %s1112_s15 = int_to_ptr.vmem [resolvable:$true] %s158_s15 }
  0x3c   : > { %s851_s16 = scalar_lea.hbm %s1110_s5, %s1099_s7  ;;  %s855_s23 = scalar_lea.hbm %s1300_s1, 384 }
  0x3d   : > { %p852_p11 = scmp.ne.s32.totalorder %s1110_s5, %s851_s16  ;;  %p856_p3 = scmp.lt.s32.totalorder %s1110_s5, %s1300_s1 }
  0x3e   : > { %p857_p5 = scmp.lt.s32.totalorder %s855_s23, %s851_s16 }
  0x3f   : > { %p853_p0 = pnand %p852_p11, %p663_p4 }
  0x40   : > { %p858_p6 = por %p857_p5, %p856_p3 }
  0x41   : > { %p854_p2 = pneg %p853_p0 }
  0x43   : > { %p859_p9 = pnand %p858_p6, %p854_p2 }
  0x45   : > { %862 = shalt.err (!%p859_p9)
}
  0x46   : > { %s863_s28 = scalar_lea.vmem %s1112_s15, %s1099_s7  ;;  %s984_s29 = smov [#allocation4]  }
  0x47   : > { %p864_p10 = scmp.ne.s32.totalorder %s1112_s15, %s863_s28  ;;  %s867_s30 = sshll.u32 %s984_s29, 4  ;;  %s868_s30 = int_to_ptr.vmem [resolvable:$false] %s867_s30 }
  0x48   : > { %s869_s3 = scalar_lea.vmem %s868_s30, 512  ;;  %p870_p1 = scmp.lt.s32.totalorder %s1112_s15, %s868_s30 }
  0x49   : > { %p865_p12 = pnand %p864_p10, %p663_p4  ;;  %p871_p8 = scmp.lt.s32.totalorder %s869_s3, %s863_s28 }
  0x4b   : > { %p866_p13 = pneg %p865_p12  ;;  %p872_p11 = por %p871_p8, %p870_p1 }
  0x4d   : > { %p873_p0 = pnand %p872_p11, %p866_p13 }
  0x4f   : > { %876 = shalt.err (!%p873_p0)
}
  0x50   : > { %s985_s6 = smov 128   ;;  %s986_s8 = smov 8  }
  0x51   : > { %164 = dma.hbm_to_vmem [thread:$0]  (%p663_p4), %s1110_s5, %s1099_s7, %s1112_s15, %s1102_s9, %s985_s6, %s985_s6, %s986_s8  }
  0x52 PF: > { %p667_p2 = scmp.ge.s32.totalorder %s947_s12, 1  ;;  %p166_p3 = scmp.lt.s32.totalorder %s947_s12, 3 }
  0x54   : > { %p167_p5 = pnand %p667_p2, %p166_p3 }
  0x55   : > { %s172_s25 = sand.u32 (!%p167_p5), 1, %s939_s10  }
  0x56   : > { %170 = sbr.rel (%p167_p5) target bundleno = 482 (0x1e2), region = 28  ;;  %s1141_s18 = sshll.u32 (!%p167_p5), %s172_s25, 4 }
  0x57   : > { %s173_s27 = scalar_lea.sflag (!%p167_p5), [#allocation3], %s172_s25  ;;  %s176_s4 = scalar_lea.vmem (!%p167_p5), [#allocation2], %s1141_s18 }
  0x5b   : > { %926 = dma.done.wait (%p1043_p7), %s173_s27, 256  }
  0x5c   : > { %928 = vsyncadd (%p1043_p7), %s173_s27, 4294967040  ;;  %s182_s7 = scalar_lea.sflag [#allocation5], %s172_s25  ;;  %s185_s9 = scalar_lea.vmem [#allocation4], %s1141_s18 }
  0x5d   : > { %930 = dma.done.wait (%p1043_p7), %s182_s7, 256  }
  0x5e   : > { %932 = vsyncadd (%p1043_p7), %s182_s7, 4294967040  ;;  %v225_v0 = vld [vmem:[%s176_s4] sm:$0xff]  ;;  %vm237_vm0 = vcmask 261120   ;;  %v1155_v2 = vld [vmem:[%s176_s4 + $0x8] sm:$0xff]  ;;  %v987_v14 = vmov 1.0   ;;  %s671_s12 = sshll.u32 %s1022_s13, 4 }
  0x5f   : > { %v1153_v1 = vld [vmem:[%s185_s9] sm:$0xff]  ;;  %v233_v3 = vsub.f32 0.0, %v225_v0  ;;  %v1159_v4 = vld [vmem:[%s185_s9 + $0x8] sm:$0xff]  ;;  %v234_v5 = vsub.f32 0.0, %v1155_v2  ;;  %s1246_s19 = scalar_lea.vmem [#allocation6], %s1141_s18   ;;  %p1305_p7 = scmp.ne.s32.totalorder %s1304_s20, 0 }
  0x60   : > { %vm231_vm1 = vcmp.eq.f32.partialorder %v1153_v1, 0.0  ;;  %vm229_vm2 = vcmp.eq.f32.partialorder %v1153_v1, 1.0  ;;  %vm232_vm3 = vcmp.eq.f32.partialorder %v1159_v4, 0.0  ;;  %vm230_vm4 = vcmp.eq.f32.partialorder %v1159_v4, 1.0  ;;  %s673_s5 = sshll.u32 (%p1305_p7), %s1022_s13, 1  ;;  %s1262_s21 = scalar_lea.vmem (%p1305_p7), %s1301_s2, %s671_s12  }
  0x61   : > { %v235_v6 = vsel %vm231_vm1, %v225_v0, -inf  ;;  %v244_v8 = vsel %vm229_vm2, %v233_v3, -inf  ;;  %v236_v9 = vsel %vm232_vm3, %v1155_v2, -inf  ;;  %v245_v10 = vsel %vm230_vm4, %v234_v5, -inf  ;;  %vm252_vm5 = vmor %vm229_vm2, %vm231_vm1  ;;  %s404_s22 = ssub.s32 (%p1305_p7), 3, %s673_s5 }
  0x62   : > { %v238_v7 = vsel %vm237_vm0, %v235_v6, -inf  ;;  %v246_v11 = vsel %vm237_vm0, %v244_v8, -inf  ;;  %vm253_vm6 = vmor %vm230_vm4, %vm232_vm3  ;;  %v241_v12 = vsel %vm237_vm0, %v236_v9, -inf  ;;  %v249_v13 = vsel %vm237_vm0, %v245_v10, -inf  ;;  %p405_p4 = scmp.lt.s32.totalorder (%p1305_p7), %s404_s22, 2 }
  0x63   : > { %239 = vmax.xlane.f32.xlu0 %v238_v7  ;;  %247 = vmax.xlane.f32.xlu1 %v246_v11  ;;  %v254_v15 = vsel %vm252_vm5, 0.0, %v987_v14  ;;  %v255_v16 = vsel %vm253_vm6, 0.0, %v987_v14 }
  0x64   : > { %v256_v17 = vsel %vm237_vm0, %v254_v15, 0.0  ;;  %v259_v18 = vsel %vm237_vm0, %v255_v16, 0.0 }
  0x67   : > { %242 = vmax.xlane.f32.xlu0 %v241_v12  ;;  %250 = vmax.xlane.f32.xlu1 %v249_v13 }
  0x6b   : > { %257 = vadd.xlane.f32.xlu0 %v256_v17  ;;  %260 = vadd.xlane.f32.xlu1 %v259_v18 }
  0xec   : > { %v240_v19 = vpop.xlane.xlu0 %239  ;;  %v248_v20 = vpop.xlane.xlu1 %247 }
  0xed   : > { %v264_v23 = vmax.f32 %v240_v19, 0.0  ;;  %v268_v24 = vmax.f32 %v248_v20, 0.0 }
  0xf0   : > { %v243_v21 = vpop.xlane.xlu0 %242  ;;  %v251_v22 = vpop.xlane.xlu1 %250 }
  0xf1   : > { %v265_v26 = vmax.f32 %v243_v21, 0.0  ;;  %v269_v28 = vmax.f32 %v251_v22, 0.0 }
  0xf4   : > { %v1187_v25 = vpop.xlane.xlu0 %257  ;;  %v1190_v27 = vpop.xlane.xlu1 %260 }
  0xf5   : > { %vm262_vm7 = vcmp.gt.f32.partialorder %v1187_v25, 0.0  ;;  %vm263_vm8 = vcmp.gt.f32.partialorder %v1190_v27, 0.0 }
  0xf6   : > { %v266_v29 = vsel %vm262_vm7, %v264_v23, %v240_v19  ;;  %v270_v30 = vsel %vm262_vm7, %v268_v24, %v248_v20  ;;  %v267_v32 = vsel %vm263_vm8, %v265_v26, %v243_v21  ;;  %v271_v35 = vsel %vm263_vm8, %v269_v28, %v251_v22 }
  0xf7   : > { %vm272_vm9 = vcmp.eq.f32.partialorder %v266_v29, -inf  ;;  %vm276_vm10 = vcmp.eq.f32.partialorder %v270_v30, -inf  ;;  %v1193_v31 = vadd.f32 %v270_v30, %v266_v29  ;;  %vm273_vm11 = vcmp.eq.f32.partialorder %v267_v32, -inf }
  0xf8   : > { %v274_v33 = vsel %vm272_vm9, 0.0, %v266_v29  ;;  %v278_v34 = vsel %vm276_vm10, 0.0, %v270_v30  ;;  %v275_v38 = vsel %vm273_vm11, 0.0, %v267_v32  ;;  %vm277_vm12 = vcmp.eq.f32.partialorder %v271_v35, -inf }
  0xf9   : > { %v280_v36 = vsub.f32 %v233_v3, %v278_v34  ;;  %v282_v37 = vsub.f32 %v225_v0, %v274_v33  ;;  %v279_v40 = vsel %vm277_vm12, 0.0, %v271_v35  ;;  %v283_v43 = vsub.f32 %v1155_v2, %v275_v38 }
  0xfa   : > { %v281_v42 = vsub.f32 %v234_v5, %v279_v40  ;;  %v1200_v46 = vadd.f32 %v271_v35, %v267_v32  ;;  %v330_v57 = vmax.f32 %v1193_v31, 0.0  ;;  %v316_v58 = vsub.f32 0.0, %v274_v33 }
  0xfb   : > { %v284_v39 = vsel %vm229_vm2, %v280_v36, %v282_v37  ;;  %vm328_vm13 = vcmp.gt.f32.partialorder %v1193_v31, -inf  ;;  %v298_v60 = vsub.f32 0.0, %v278_v34  ;;  %v317_v63 = vsub.f32 0.0, %v275_v38 }
  0xfc   : > { %v286_v41 = vmul.f32 1.442695, %v284_v39  ;;  %v285_v44 = vsel %vm230_vm4, %v281_v42, %v283_v43  ;;  %v1218_v59 = vsel %vm328_vm13, %v330_v57, 0.0  ;;  %v318_v61 = vmul.f32 1.442695, %v316_v58 }
  0xfd   : > { %v288_v45 = vmul.f32 1.442695, %v285_v44  ;;  %v331_v62 = vmax.f32 %v1200_v46, 0.0  ;;  %vm329_vm14 = vcmp.gt.f32.partialorder %v1200_v46, -inf  ;;  %v334_v0 = vsub.f32 %v1193_v31, %v1218_v59 }
  0xfe   : > { %797 = vpow2.f32 %v286_v41  ;;  %v300_v1 = vmul.f32 1.442695, %v298_v60  ;;  %v320_v3 = vmul.f32 1.442695, %v317_v63  ;;  %v299_v5 = vsub.f32 0.0, %v279_v40 }
  0xff   : > { %799 = vpow2.f32 %v288_v45  ;;  %v1226_v2 = vsel %vm329_vm14, %v331_v62, 0.0  ;;  %v336_v4 = vmul.f32 1.442695, %v334_v0  ;;  %v366_v7 = vsub.f32 0.0, %v1218_v59 }
 0x100   : > { %801 = vpow2.f32 %v318_v61  ;;  %v335_v6 = vsub.f32 %v1200_v46, %v1226_v2  ;;  %v302_v8 = vmul.f32 1.442695, %v299_v5  ;;  %v367_v11 = vsub.f32 0.0, %v1226_v2 }
 0x101   : > { %803 = vpow2.f32 %v300_v1  ;;  %v368_v10 = vmul.f32 1.442695, %v366_v7  ;;  %v383_v45 = vlaneseq  ;;  %vm347_vm5 = vcmp.eq.f32.partialorder %v1226_v2, 0.0 }
 0x102   : > { %805 = vpow2.f32 %v320_v3  ;;  %v338_v9 = vmul.f32 1.442695, %v335_v6  ;;  %v370_v13 = vmul.f32 1.442695, %v367_v11 }
 0x103   : > { %807 = vpow2.f32 %v336_v4 }
 0x104   : > { %809 = vpow2.f32 %v302_v8 }
 0x105   : > { %811 = vpow2.f32 %v338_v9 }
 0x106   : > { %813 = vpow2.f32 %v368_v10 }
 0x107   : > { %815 = vpow2.f32 %v370_v13 }
 0x10b   : > { %v798_v47 = vpop.eup %797 }
 0x10c   : > { %v308_v48 = vsel %vm231_vm1, %v798_v47, 0.0  ;;  %v290_v50 = vsel %vm229_vm2, %v798_v47, 0.0  ;;  %v800_v51 = vpop.eup %799  ;;  %v386_v47 = vstv %s671_s12  ;;  %vm346_vm1 = vcmp.eq.f32.partialorder %v1218_v59, 0.0 }
 0x10d   : > { %v310_v49 = vsel %vm237_vm0, %v308_v48, 0.0  ;;  %v309_v52 = vsel %vm232_vm3, %v800_v51, 0.0  ;;  %v292_v53 = vsel %vm237_vm0, %v290_v50, 0.0  ;;  %v291_v55 = vsel %vm230_vm4, %v800_v51, 0.0  ;;  %v802_v12 = vpop.eup %801 }
 0x10e   : > { %311 = vadd.xlane.f32.xlu0 %v310_v49  ;;  %v313_v54 = vsel %vm237_vm0, %v309_v52, 0.0  ;;  %v295_v56 = vsel %vm237_vm0, %v291_v55, 0.0  ;;  %v322_v14 = vmul.f32 %v802_v12, %v1187_v25  ;;  %v804_v15 = vpop.eup %803  ;;  %vm393_vm2 = vcmask 7168  }
 0x10f   : > { %314 = vadd.xlane.f32.xlu1 %v313_v54  ;;  %v806_v17 = vpop.eup %805  ;;  %v304_v21 = vmul.f32 %v804_v15, %v1187_v25 }
 0x110   : > { %v808_v19 = vpop.eup %807  ;;  %v323_v22 = vmul.f32 %v806_v17, %v1190_v27 }
 0x111   : > { %v810_v28 = vpop.eup %809 }
 0x112   : > { %293 = vadd.xlane.f32.xlu0 %v292_v53  ;;  %v812_v30 = vpop.eup %811  ;;  %v305_v36 = vmul.f32 %v810_v28, %v1190_v27  ;;  %v384_v27 = vshrl.u32 %v383_v45, 7 }
 0x113   : > { %296 = vadd.xlane.f32.xlu1 %v295_v56  ;;  %v814_v34 = vpop.eup %813 }
 0x114   : > { %v816_v41 = vpop.eup %815  ;;  %v387_v52 = vadd.s32 %v386_v47, %v384_v27  ;;  %v385_v56 = vadd.s32 8, %v384_v27 }
 0x116   : > { %vm389_vm0 = vcmp.lt.s32.totalorder %v387_v52, 22  ;;  %v388_v0 = vadd.s32 %v386_v47, %v385_v56 }
 0x118   : > { %vm390_vm4 = vcmp.lt.s32.totalorder %v388_v0, 22 }
 0x197   : > { %v312_v16 = vpop.xlane.xlu0 %311 }
 0x198   : > { %v324_v18 = vadd.f32 %v322_v14, %v312_v16  ;;  %v315_v24 = vpop.xlane.xlu1 %314 }
 0x199   : > { %v325_v29 = vadd.f32 %v323_v22, %v315_v24 }
 0x19a   : > { %v340_v20 = vmul.f32 %v808_v19, %v324_v18 }
 0x19b   : > { %v294_v23 = vpop.xlane.xlu0 %293  ;;  %v341_v33 = vmul.f32 %v812_v30, %v325_v29 }
 0x19c   : > { %v306_v26 = vadd.f32 %v304_v21, %v294_v23  ;;  %v297_v37 = vpop.xlane.xlu1 %296 }
 0x19d   : > { %v307_v39 = vadd.f32 %v305_v36, %v297_v37 }
 0x19e   : > { %v342_v32 = vmul.f32 %v340_v20, %v306_v26 }
 0x19f   : > { %v343_v40 = vmul.f32 %v341_v33, %v307_v39 }
 0x1a0   : > { %v344_v35 = vsel %vm328_vm13, %v342_v32, 0.0 }
 0x1a1   : > { %v348_v38 = vadd.f32 1.0, %v344_v35  ;;  %v372_v25 = vadd.f32 %v814_v34, %v344_v35  ;;  %v345_v42 = vsel %vm329_vm14, %v343_v40, 0.0  ;;  %v351_v31 = vmul.f32 -0.5, %v344_v35 }
 0x1a2   : > { %v357_v43 = vadd.f32 1.0, %v345_v42  ;;  %v373_v44 = vadd.f32 %v816_v41, %v345_v42  ;;  %v354_v49 = vand.u32 2147483647, %v344_v35  ;;  %v360_v50 = vmul.f32 -0.5, %v345_v42 }
 0x1a3   : > { %817 = vlog2.f32 %v348_v38  ;;  %v352_v48 = vadd.f32 1.0, %v351_v31  ;;  %v363_v61 = vand.u32 2147483647, %v345_v42 }
 0x1a4   : > { %819 = vlog2.f32 %v372_v25  ;;  %vm355_vm15 = vcmp.lt.f32.partialorder %v354_v49, 0.0004427343  ;;  %v361_v58 = vadd.f32 1.0, %v360_v50 }
 0x1a5   : > { %821 = vlog2.f32 %v357_v43  ;;  %v353_v55 = vmul.f32 %v352_v48, %v344_v35  ;;  %vm364_vm3 = vcmp.lt.f32.partialorder %v363_v61, 0.0004427343 }
 0x1a6   : > { %823 = vlog2.f32 %v373_v44  ;;  %v362_v5 = vmul.f32 %v361_v58, %v345_v42 }
 0x1b0   : > { %v818_v51 = vpop.eup %817 }
 0x1b1   : > { %v820_v53 = vpop.eup %819  ;;  %v350_v54 = vmul.f32 0.6931472, %v818_v51 }
 0x1b2   : > { %v375_v46 = vmul.f32 0.6931472, %v820_v53  ;;  %v822_v62 = vpop.eup %821 }
 0x1b3   : > { %v356_v57 = vsel %vm355_vm15, %v353_v55, %v350_v54  ;;  %v824_v1 = vpop.eup %823  ;;  %v359_v4 = vmul.f32 0.6931472, %v822_v62 }
 0x1b4   : > { %v378_v60 = vadd.f32 %v375_v46, %v1218_v59  ;;  %v377_v6 = vmul.f32 0.6931472, %v824_v1 }
 0x1b5   : > { %v365_v7 = vsel %vm364_vm3, %v362_v5, %v359_v4 }
 0x1b6   : > { %v380_v63 = vsel %vm346_vm1, %v356_v57, %v378_v60  ;;  %v379_v59 = vadd.f32 %v377_v6, %v1226_v2  ;;  %402 = sbr.rel (!%p1305_p7) target bundleno = 482 (0x1e2), region = 40 }
 0x1b7   : > { %v391_v3 = vsel %vm389_vm0, %v380_v63, 0.0 }
 0x1b8   : > { %394 = vst.msk [vmem:[%s1246_s19] sm:$0xff] %vm393_vm2, %v391_v3  ;;  %v381_v8 = vsel %vm347_vm5, %v365_v7, %v379_v59 }
 0x1b9   : > { %v392_v9 = vsel %vm390_vm4, %v381_v8, 0.0 }
 0x1ba   : > { %395 = vst.msk [vmem:[%s1246_s19 + $0x8] sm:$0xff] %vm393_vm2, %v392_v9 }
 0x1bb   : > { %s1315_s22 = smov (!%p405_p4, %s404_s22), 2 }
 0x1bc   : > { %s674_s23 = sshll.u32 %s1315_s22, 7 }
 0x1bd   : > { %p677_p6 = scmp.eq.s32.totalorder %s674_s23, 0 }
 0x1be   : > { %s1268_s20 = sshrl.u32 (!%p677_p6), %s1315_s22, 1 }
 0x1bf   : > { %413 = sbr.rel (%p677_p6) target bundleno = 482 (0x1e2), region = 44  ;;  %p678_p9 = scmp.le.s32.totalorder (!%p677_p6), %s1268_s20, 0 }
 0x1c4   : > { %594 = sbr.rel (%p678_p9) target bundleno = 465 (0x1d1), region = 135  ;;  %s949_s13 = smov (!%p678_p9), %s1262_s21  }
 0x1c5   : > { %s953_s24 = smov (!%p678_p9), %s1246_s19   ;;  %s957_s26 = smov (!%p678_p9), 0  }
 0x1c6   : > { %s961_s28 = smov (!%p678_p9), 0  }
 0x1c9 LB: >> { %v478_v2 = vld [vmem:[%s955_s24] sm:$0xff]  ;;  %v480_v10 = vld [vmem:[%s955_s24 + $0x8] sm:$0xff]  ;;  %s482_s29 = sadd.s32 1, %s959_s26  ;;  %s472_s28 = sadd.s32 1, %s963_s28   ;;  %s963_s28 = sphi %s961_s28, %s472_s28   ;;  %s959_s26 = sphi %s957_s26, %s958_s26   ;;  %s955_s24 = sphi %s953_s24, %s487_s24   ;;  %s951_s13 = sphi %s949_s13, %s488_s13  }
 0x1ca   : >> { %479 = vst [vmem:[%s951_s13] sm:$0xff] %v478_v2  ;;  %481 = vst [vmem:[%s951_s13 + $0x8] sm:$0xff] %v480_v10  ;;  %p483_p10 = scmp.ge.s32.totalorder %s482_s29, %s1268_s20  ;;  %p471_p12 = scmp.ge.s32.totalorder %s472_s28, %s1268_s20 }
 0x1cc   : >> { %s1317_s29 = smov (%p483_p10, %s482_s29), 0  ;;  %474 = sbr.rel (!%p471_p12) target bundleno = 457 (0x1c9), region = 141 }
 0x1cd   : >> { %s679_s30 = sshll.u32 %s1317_s29, 4  ;;  %s958_s26 = smov %s1317_s29  }
 0x1ce   : >> { %s487_s24 = scalar_lea.vmem %s1246_s19, %s679_s30 [#allocation6]   ;;  %s488_s13 = scalar_lea.vmem %s1262_s21, %s679_s30  }
 0x1d1 PF: > { %s1278_s3 = sand.u32 1, %s1315_s22   ;;  %s692_s6 = sshll.u32 %s1268_s20, 4 }
 0x1d2   : > { %s493_s8 = scalar_lea.vmem %s1246_s19, %s692_s6 [#allocation6]   ;;  %s495_s25 = scalar_lea.vmem %s1262_s21, %s692_s6  }
 0x1d3   : > { %p684_p13 = scmp.le.s32.totalorder %s1278_s3, 0 }
 0x1d4   : > { %s965_s18 = smov (!%p684_p13), %s495_s25   ;;  %s969_s27 = smov (!%p684_p13), %s493_s8  }
 0x1d5   : > { %608 = sbr.rel (%p684_p13) target bundleno = 482 (0x1e2), region = 146  ;;  %s973_s4 = smov (!%p684_p13), 0  }
 0x1d6   : > { %s977_s7 = smov (!%p684_p13), 0  }
 0x1da LB: >> { %v505_v11 = vld [vmem:[%s971_s27] sm:$0xff]  ;;  %s507_s9 = sadd.s32 1, %s975_s4  ;;  %s499_s7 = sadd.s32 1, %s979_s7   ;;  %s979_s7 = sphi %s977_s7, %s499_s7   ;;  %s975_s4 = sphi %s973_s4, %s974_s4   ;;  %s971_s27 = sphi %s969_s27, %s512_s27   ;;  %s967_s18 = sphi %s965_s18, %s513_s18  }
 0x1db   : >> { %506 = vst [vmem:[%s967_s18] sm:$0xff] %v505_v11  ;;  %p508_p1 = scmp.ge.s32.totalorder %s507_s9, %s1278_s3  ;;  %p498_p8 = scmp.ge.s32.totalorder %s499_s7, %s1278_s3 }
 0x1dd   : >> { %s1319_s9 = smov (%p508_p1, %s507_s9), 0  ;;  %501 = sbr.rel (!%p498_p8) target bundleno = 474 (0x1da), region = 152 }
 0x1de   : >> { %s685_s12 = sshll.u32 %s1319_s9, 3  ;;  %s974_s4 = smov %s1319_s9  }
 0x1df   : >> { %s512_s27 = scalar_lea.vmem %s493_s8, %s685_s12 [#allocation6]   ;;  %s513_s18 = scalar_lea.vmem %s495_s25, %s685_s12  }
 0x1e2 PF: > { %p15_p11 = scmp.ge.s32.totalorder %s1025_s14, 4   ;;  %s1306_s9 = smov %s939_s10 }
 0x1e3   : > { %s1307_s10 = smov %s943_s11  ;;  %s1308_s11 = smov %s1035_s17 }
 0x1e4   : > { %s1309_s12 = smov %s1025_s14  ;;  %17 = sbr.rel (!%p15_p11) target bundleno = 5 (0x5), region = 163 }
 0x1e9   :  { %529 = vsyncpa [#allocation3], 1 }
 0x1ea   :  { %531 = vsyncpa [#allocation3 + $0x1], 1 }
 0x1eb   :  { %532 = vsyncpa [#allocation5], 1 }
 0x1ec   :  { %534 = vsyncpa [#allocation5 + $0x1], 1 }

</bundles_post_ra>
